<compile_context>
chip_gen: v6e
topology: v6e:2x2x1
jax: 0.10.0
libtpu: 0.0.40
codegen_flags: <defaults>
</compile_context>

<pallas_src>
import jax
import jax.numpy as jnp
from jax.experimental import pallas as pl
from jax.experimental.pallas import tpu as pltpu


def _make_kernel(chunk, n_chunks):
    """Kernel over one (tile_b, 3) batch tile, chunked along the batch axis."""

    def kernel(x_ref, w1_ref, b1_ref, w2t_ref, b2_ref, w3_ref, b3_ref, o_ref):
        # Tiny weights/biases: loaded once, stay in vregs across the chunk loop.
        w1 = w1_ref[...]          # (3, 64)   f32
        b1 = b1_ref[...]          # (1, 64)   f32
        w2t = w2t_ref[...]        # (32, 64)  bf16
        b2 = b2_ref[...]          # (32, 1)   f32
        w3 = w3_ref[...]          # (32, 1)   f32
        b3 = b3_ref[...]          # (1, 1)    f32

        # Statically unrolled chunk loop (n_chunks <= 16): per-chunk h1/h2 are
        # small enough to live in vregs, avoiding big VMEM intermediates.
        for c in range(n_chunks):
            lo = c * chunk
            xc = x_ref[lo:lo + chunk, :]                          # (chunk, 3), batch on sublanes

            # fc1 + relu on the MXU (K=3 -> a handful of pushes; MXU is idle anyway).
            h1 = jnp.dot(xc, w1, preferred_element_type=jnp.float32) + b1
            h1 = jnp.maximum(h1, 0.0).astype(jnp.bfloat16)        # (chunk, 64) bf16

            # fc2 + relu: bf16 MXU matmul in NT form (attention-style); contracting
            # the feature axis moves the batch onto lanes -> lane-dense activations.
            h2 = jax.lax.dot_general(
                w2t, h1, (((1,), (1,)), ((), ())),
                preferred_element_type=jnp.float32) + b2          # (32, chunk) f32
            h2 = jnp.maximum(h2, 0.0)

            # fc3 (N=1): VPU multiply + sublane (XLU) reduce instead of a 1-wide MXU op.
            z = jnp.sum(w3 * h2, axis=0, keepdims=True) + b3      # (1, chunk)
            z = jnp.clip(z, -30.0, 30.0)                          # keep exp() finite

            # sigmoid = 1 / (1 + exp(-z)); exp + approx reciprocal both on the EUP.
            o_ref[:, lo:lo + chunk] = pl.reciprocal(1.0 + jnp.exp(-z), approx=True)

    return kernel


def _pick_tile(batch, desired):
    """Lane-tile width: multiple of 128; for big batches a multiple of 512 and
    capped so there are >=2 grid steps (keeps both v7x TensorCores busy)."""
    desired = max(128, (desired // 128) * 128)
    if batch >= 1024:
        return min(desired, max(512, (batch // 2) // 512 * 512))
    return min(desired, ((batch + 127) // 128) * 128)


def _pick_chunk(tile_b):
    for c in (512, 256, 128):
        if tile_b % c == 0:
            return c
    return 128


def sismonet_forward(x, params, tile_b=8192):
    """x: (B, 3) float32; params: dict of w1,b1,w2,b2,w3,b3.  Returns (B, 1) f32."""
    B = x.shape[0]
    x = x.astype(jnp.float32)

    tile = _pick_tile(B, tile_b)
    chunk = _pick_chunk(tile)

    if B < tile:                          # tiny batches only; pad cost negligible
        x = jnp.pad(x, ((0, tile - B), (0, 0)))
    Bp = max(B, tile)
    n_tiles = pl.cdiv(Bp, tile)           # ragged last block handled by Pallas masking

    w1 = params["w1"].astype(jnp.float32)                 # (3, 64)
    b1 = params["b1"].reshape(1, 64).astype(jnp.float32)  # (1, 64)
    w2t = params["w2"].T.astype(jnp.bfloat16)              # (32, 64) bf16 for the MXU
    b2 = params["b2"].reshape(32, 1).astype(jnp.float32)   # (32, 1)
    w3 = params["w3"].reshape(32, 1).astype(jnp.float32)   # (32, 1)
    b3 = params["b3"].reshape(1, 1).astype(jnp.float32)    # (1, 1)

    out = pl.pallas_call(
        _make_kernel(chunk, tile // chunk),
        out_shape=jax.ShapeDtypeStruct((1, Bp), jnp.float32),
        grid=(n_tiles,),
        in_specs=[
            pl.BlockSpec((tile, 3), lambda i: (i, 0)),     # x tile, pipelined over batch
            pl.BlockSpec((3, 64), lambda i: (0, 0)),       # weights/biases: VMEM-resident
            pl.BlockSpec((1, 64), lambda i: (0, 0)),
            pl.BlockSpec((32, 64), lambda i: (0, 0)),
            pl.BlockSpec((32, 1), lambda i: (0, 0)),
            pl.BlockSpec((32, 1), lambda i: (0, 0)),
            pl.BlockSpec((1, 1), lambda i: (0, 0)),
        ],
        out_specs=pl.BlockSpec((1, tile), lambda i: (0, i)),
        compiler_params=pltpu.CompilerParams(
            dimension_semantics=("parallel",),
            vmem_limit_bytes=32 * 1024 * 1024),
    )(x, w1, b1, w2t, b2, w3, b3)

    return out[0, :B].reshape(B, 1)       # slice + reshape: no output transpose copy


def init_params(key):
    """Deterministic init mimicking nn.Linear default (uniform +-1/sqrt(fan_in))."""
    ks = jax.random.split(key, 6)

    def linear(kw, kb, fan_in, fan_out):
        bound = 1.0 / jnp.sqrt(float(fan_in))
        w = jax.random.uniform(kw, (fan_in, fan_out), jnp.float32, -bound, bound)
        b = jax.random.uniform(kb, (1, fan_out), jnp.float32, -bound, bound)
        return w, b

    w1, b1 = linear(ks[0], ks[1], 3, 64)
    w2, b2 = linear(ks[2], ks[3], 64, 32)
    w3, b3 = linear(ks[4], ks[5], 32, 1)
    return {"w1": w1, "b1": b1, "w2": w2, "b2": b2, "w3": w3, "b3": b3}


def reference_forward(x, p):
    h1 = jnp.maximum(x @ p["w1"] + p["b1"], 0.0)
    h2 = jnp.maximum(h1 @ p["w2"] + p["b2"], 0.0)
    return jax.nn.sigmoid(h2 @ p["w3"] + p["b3"])


if __name__ == "__main__":
    key = jax.random.PRNGKey(0)
    kx, kp = jax.random.split(key)
    params = init_params(kp)

    # Small-batch smoke test (wrapper pads to one 128-wide lane tile).
    B = 8
    x = jax.random.normal(kx, (B, 3), jnp.float32)
    out = jax.block_until_ready(sismonet_forward(x, params))
    ref = reference_forward(x, params)
    assert out.shape == (B, 1)
    # bf16 fc2 + approximate reciprocal -> allow ~1e-2 slack on a (0,1) output.
    assert jnp.allclose(out, ref, atol=1e-2, rtol=1e-2), \
        float(jnp.max(jnp.abs(out - ref)))

    # Larger check: exercises the multi-tile grid, the ragged (masked) last
    # block and the multi-chunk inner loop.
    B2 = 2500
    x2 = jax.random.normal(kx, (B2, 3), jnp.float32)
    out2 = jax.block_until_ready(sismonet_forward(x2, params))
    ref2 = reference_forward(x2, params)
    assert jnp.allclose(out2, ref2, atol=1e-2, rtol=1e-2), \
        float(jnp.max(jnp.abs(out2 - ref2)))

    print("KERNEL_OK")
</pallas_src>

<mosaic_0001>
module attributes {stable_mosaic.version = 11 : i64} {
  func.func @kernel(%arg0: i32, %arg1: memref<128x3xf32, #tpu.memory_space<vmem>>, %arg2: memref<3x64xf32, #tpu.memory_space<vmem>>, %arg3: memref<1x64xf32, #tpu.memory_space<vmem>>, %arg4: memref<32x64xbf16, #tpu.memory_space<vmem>>, %arg5: memref<32x1xf32, #tpu.memory_space<vmem>>, %arg6: memref<32x1xf32, #tpu.memory_space<vmem>>, %arg7: memref<1x1xf32, #tpu.memory_space<vmem>>, %arg8: memref<1x128xf32, #tpu.memory_space<vmem>>) attributes {dimension_semantics = [#tpu.dimension_semantics<parallel>], iteration_bounds = array<i64: 1>, scalar_prefetch = 0 : i64, scratch_operands = 0 : i64, tpu.core_type = #tpu.core_type<tc>, window_params = [{transform_indices = @transform_0, window_bounds = array<i64: 128, 3>}, {pipeline_mode = #tpu.pipeline_mode<synchronous>, transform_indices = @transform_1, window_bounds = array<i64: 3, 64>}, {pipeline_mode = #tpu.pipeline_mode<synchronous>, transform_indices = @transform_2, window_bounds = array<i64: 1, 64>}, {pipeline_mode = #tpu.pipeline_mode<synchronous>, transform_indices = @transform_3, window_bounds = array<i64: 32, 64>}, {pipeline_mode = #tpu.pipeline_mode<synchronous>, transform_indices = @transform_4, window_bounds = array<i64: 32, 1>}, {pipeline_mode = #tpu.pipeline_mode<synchronous>, transform_indices = @transform_5, window_bounds = array<i64: 32, 1>}, {pipeline_mode = #tpu.pipeline_mode<synchronous>, transform_indices = @transform_6, window_bounds = array<i64: 1, 1>}, {transform_indices = @transform_7, window_bounds = array<i64: 1, 128>}]} {
    %c0 = arith.constant 0 : index
    %c0_0 = arith.constant 0 : index
    %0 = vector.load %arg2[%c0, %c0_0] : memref<3x64xf32, #tpu.memory_space<vmem>>, vector<3x64xf32>
    %c0_1 = arith.constant 0 : index
    %c0_2 = arith.constant 0 : index
    %1 = vector.load %arg3[%c0_1, %c0_2] : memref<1x64xf32, #tpu.memory_space<vmem>>, vector<1x64xf32>
    %c0_3 = arith.constant 0 : index
    %c0_4 = arith.constant 0 : index
    %2 = vector.load %arg4[%c0_3, %c0_4] : memref<32x64xbf16, #tpu.memory_space<vmem>>, vector<32x64xbf16>
    %c0_5 = arith.constant 0 : index
    %c0_6 = arith.constant 0 : index
    %3 = vector.load %arg5[%c0_5, %c0_6] : memref<32x1xf32, #tpu.memory_space<vmem>>, vector<32x1xf32>
    %c0_7 = arith.constant 0 : index
    %c0_8 = arith.constant 0 : index
    %4 = vector.load %arg6[%c0_7, %c0_8] : memref<32x1xf32, #tpu.memory_space<vmem>>, vector<32x1xf32>
    %c0_9 = arith.constant 0 : index
    %c0_10 = arith.constant 0 : index
    %5 = vector.load %arg7[%c0_9, %c0_10] : memref<1x1xf32, #tpu.memory_space<vmem>>, vector<1x1xf32>
    %c0_11 = arith.constant 0 : index
    %c0_12 = arith.constant 0 : index
    %6 = vector.load %arg1[%c0_11, %c0_12] : memref<128x3xf32, #tpu.memory_space<vmem>>, vector<128x3xf32>
    %cst = arith.constant dense<0.000000e+00> : vector<128x64xf32>
    %7 = tpu.matmul %6, %0, %cst {dimension_numbers = #tpu.dot_dimension_numbers<[1], [0], [0], [1], [0, 0, 1, 1], [], []>} : vector<128x3xf32>, vector<3x64xf32>, vector<128x64xf32> -> vector<128x64xf32>
    %8 = vector.broadcast %1 : vector<1x64xf32> to vector<128x64xf32>
    %9 = arith.addf %7, %8 : vector<128x64xf32>
    %cst_13 = arith.constant 0.000000e+00 : f32
    %10 = vector.broadcast %cst_13 : f32 to vector<128x64xf32>
    %11 = arith.maximumf %9, %10 : vector<128x64xf32>
    %12 = arith.truncf %11 : vector<128x64xf32> to vector<128x64xbf16>
    %cst_14 = arith.constant dense<0.000000e+00> : vector<32x128xf32>
    %13 = tpu.matmul %2, %12, %cst_14 {dimension_numbers = #tpu.dot_dimension_numbers<[1], [1], [0], [0], [0, 0, 1, 0], [], []>} : vector<32x64xbf16>, vector<128x64xbf16>, vector<32x128xf32> -> vector<32x128xf32>
    %14 = vector.broadcast %3 : vector<32x1xf32> to vector<32x128xf32>
    %15 = arith.addf %13, %14 : vector<32x128xf32>
    %cst_15 = arith.constant 0.000000e+00 : f32
    %16 = vector.broadcast %cst_15 : f32 to vector<32x128xf32>
    %17 = arith.maximumf %15, %16 : vector<32x128xf32>
    %18 = vector.broadcast %4 : vector<32x1xf32> to vector<32x128xf32>
    %19 = arith.mulf %18, %17 : vector<32x128xf32>
    %cst_16 = arith.constant dense<0.000000e+00> : vector<128xf32>
    %20 = vector.multi_reduction <add>, %19, %cst_16 [0] : vector<32x128xf32> to vector<128xf32>
    %21 = vector.shape_cast %20 : vector<128xf32> to vector<1x128xf32>
    %22 = vector.broadcast %5 : vector<1x1xf32> to vector<1x128xf32>
    %23 = arith.addf %21, %22 : vector<1x128xf32>
    %cst_17 = arith.constant -3.000000e+01 : f32
    %cst_18 = arith.constant 3.000000e+01 : f32
    %24 = vector.broadcast %cst_17 : f32 to vector<1x128xf32>
    %25 = arith.maximumf %24, %23 : vector<1x128xf32>
    %26 = vector.broadcast %cst_18 : f32 to vector<1x128xf32>
    %27 = arith.minimumf %26, %25 : vector<1x128xf32>
    %cst_19 = arith.constant 0.000000e+00 : f32
    %28 = vector.broadcast %cst_19 : f32 to vector<1x128xf32>
    %29 = arith.subf %28, %27 : vector<1x128xf32>
    %30 = math.exp %29 : vector<1x128xf32>
    %cst_20 = arith.constant 1.000000e+00 : f32
    %31 = vector.broadcast %cst_20 : f32 to vector<1x128xf32>
    %32 = arith.addf %31, %30 : vector<1x128xf32>
    %33 = tpu.reciprocal %32 {approx = true} : vector<1x128xf32> -> vector<1x128xf32>
    %c0_21 = arith.constant 0 : index
    %c0_22 = arith.constant 0 : index
    %34 = vector.load %arg8[%c0_21, %c0_22] : memref<1x128xf32, #tpu.memory_space<vmem>>, vector<1x128xf32>
    tpu.vector_store %arg8[%c0_21, %c0_22], %33 {strides = array<i32>} : memref<1x128xf32, #tpu.memory_space<vmem>>, vector<1x128xf32>,
    return
  }
  func.func @transform_0(%arg0: i32) -> (i32, i32) {
    %c0_i32 = arith.constant 0 : i32
    %c0_i32_0 = arith.constant 0 : i32
    return %arg0, %c0_i32 : i32, i32
  }
  func.func @transform_1(%arg0: i32) -> (i32, i32) {
    %c0_i32 = arith.constant 0 : i32
    %c0_i32_0 = arith.constant 0 : i32
    %c0_i32_1 = arith.constant 0 : i32
    return %c0_i32, %c0_i32_0 : i32, i32
  }
  func.func @transform_2(%arg0: i32) -> (i32, i32) {
    %c0_i32 = arith.constant 0 : i32
    %c0_i32_0 = arith.constant 0 : i32
    %c0_i32_1 = arith.constant 0 : i32
    return %c0_i32, %c0_i32_0 : i32, i32
  }
  func.func @transform_3(%arg0: i32) -> (i32, i32) {
    %c0_i32 = arith.constant 0 : i32
    %c0_i32_0 = arith.constant 0 : i32
    %c0_i32_1 = arith.constant 0 : i32
    return %c0_i32, %c0_i32_0 : i32, i32
  }
  func.func @transform_4(%arg0: i32) -> (i32, i32) {
    %c0_i32 = arith.constant 0 : i32
    %c0_i32_0 = arith.constant 0 : i32
    %c0_i32_1 = arith.constant 0 : i32
    return %c0_i32, %c0_i32_0 : i32, i32
  }
  func.func @transform_5(%arg0: i32) -> (i32, i32) {
    %c0_i32 = arith.constant 0 : i32
    %c0_i32_0 = arith.constant 0 : i32
    %c0_i32_1 = arith.constant 0 : i32
    return %c0_i32, %c0_i32_0 : i32, i32
  }
  func.func @transform_6(%arg0: i32) -> (i32, i32) {
    %c0_i32 = arith.constant 0 : i32
    %c0_i32_0 = arith.constant 0 : i32
    %c0_i32_1 = arith.constant 0 : i32
    return %c0_i32, %c0_i32_0 : i32, i32
  }
  func.func @transform_7(%arg0: i32) -> (i32, i32) {
    %c0_i32 = arith.constant 0 : i32
    %c0_i32_0 = arith.constant 0 : i32
    return %c0_i32, %arg0 : i32, i32
  }
}

</mosaic_0001>

<bundles_post_ra>
// kernel: tpu_custom_call.1
= control target key start
LH: loop header
LB: loop body
LE: loop exit
PB: predicated region body
PF: predicated region fallthrough
CT: control target
= control target key end

     0   :  { %s792_s0 = inlined_call_operand.vmem [shape: f32[128,3], index: 0, kind: input, shape index: {}]   ;;  %s793_s1 = inlined_call_operand.vmem [shape: f32[3,64], index: 1, kind: input, shape index: {}]   ;;  %s794_s2 = inlined_call_operand.vmem [shape: f32[1,64], index: 2, kind: input, shape index: {}]   ;;  %s795_s3 = inlined_call_operand.vmem [shape: bf16[32,64], index: 3, kind: input, shape index: {}]   ;;  %s796_s4 = inlined_call_operand.vmem [shape: f32[32,1], index: 4, kind: input, shape index: {}]   ;;  %s797_s5 = inlined_call_operand.vmem [shape: f32[32,1], index: 5, kind: input, shape index: {}]   ;;  %s798_s6 = inlined_call_operand.<no memory space> [shape: f32[1,1], index: 6, kind: input, shape index: {}]   ;;  %s799_s7 = inlined_call_operand.hbm [shape: f32[1,128], index: 7, kind: output, shape index: {}]  }
   0x1   :  { %v12_v0 = vstv %s798_s6 }
   0x2   :  { %13 = vst [vmem:[#allocation2] sm:$0x1] %v12_v0 }
   0x3   :  { %v30_v1 = vld [vmem:[%s793_s1] sm:$0x7]  ;;  %vm116_vm0 = vcmask 1042432   ;;  %vm67_vm1 = vcmask 23552   ;;  %v46_v3 = vld [vmem:[%s792_s0 + $0x8] sm:$0xff]  ;;  %v47_v4 = vld [vmem:[%s792_s0 + $0x10] sm:$0xff] }
   0x4   :  { %v45_v2 = vld [vmem:[%s792_s0] sm:$0xff]  ;;  %518 = vmatprep.subr.msk.mxu0 %vm116_vm0, %v30_v1  ;;  %v48_v5 = vld [vmem:[%s792_s0 + $0x18] sm:$0xff] }
   0x5   :  { %520 = vmatprep.mubr.msk.f32.mxu0 %vm67_vm1, %v45_v2  ;;  %519 = vmatpush3.msk.msra.mxu0 %vm116_vm0, %v30_v1  ;;  %v49_v6 = vld [vmem:[%s792_s0 + $0x20] sm:$0xff] }
   0x6   :  { %521 = vmatmul.mubr.msk.f32.vlgmr.msra.gmra.mxu0 %vm67_vm1, %v46_v3 }
   0x7   :  { %523 = vmatprep.mubr.msk.f32.mxu0 %vm67_vm1, %v47_v4 }
   0xa   :  { %524 = vmatmul.mubr.msk.f32.gmra.mxu0 %vm67_vm1, %v48_v5 }
   0xb   :  { %14 = vsyncpa [#allocation4], 0  ;;  %526 = vmatprep.mubr.msk.f32.mxu0 %vm67_vm1, %v49_v6  ;;  %v50_v7 = vld [vmem:[%s792_s0 + $0x28] sm:$0xff]  ;;  %v51_v8 = vld [vmem:[%s792_s0 + $0x30] sm:$0xff]  ;;  %vm319_vm2 = vcmask 523264   ;;  %v604_v21 = vmov 0  }
   0xc   :  { %v52_v9 = vld [vmem:[%s792_s0 + $0x38] sm:$0xff]  ;;  %v53_v10 = vld [vmem:[%s792_s0 + $0x40] sm:$0xff]  ;;  %v54_v11 = vld [vmem:[%s792_s0 + $0x48] sm:$0xff]  ;;  %574 = vset.pattern.permute.xlu0 %v604_v21  ;;  %575 = vset.pattern.permute.xlu1 %v604_v21 }
   0xd   :  { %v55_v12 = vld [vmem:[%s792_s0 + $0x50] sm:$0xff]  ;;  %v56_v13 = vld [vmem:[%s792_s0 + $0x58] sm:$0xff]  ;;  %v57_v14 = vld [vmem:[%s792_s0 + $0x60] sm:$0xff] }
   0xe   :  { %527 = vmatmul.mubr.msk.f32.gmra.mxu0 %vm67_vm1, %v50_v7  ;;  %v58_v15 = vld [vmem:[%s792_s0 + $0x68] sm:$0xff]  ;;  %v59_v16 = vld [vmem:[%s792_s0 + $0x70] sm:$0xff]  ;;  %v60_v17 = vld [vmem:[%s792_s0 + $0x78] sm:$0xff] }
   0xf   :  { %529 = vmatprep.mubr.msk.f32.mxu0 %vm67_vm1, %v51_v8  ;;  %v576_v18 = vld [vmem:[%s795_s3] sm:$0xff]   ;;  %v38_v20 = vld [vmem:[%s796_s4 + $0x10] sm:$0xff]  ;;  %v37_v22 = vld [vmem:[%s796_s4 + $0x8] sm:$0xff] }
  0x10   :  { %560 = vmatprep.mubr.msk.bf16.mxu1 %vm319_vm2, %v576_v18  ;;  %v36_v19 = vld [vmem:[%s796_s4] sm:$0xff]  ;;  %301 = vperm.xlu1 %575, %v38_v20   ;;  %v39_v23 = vld [vmem:[%s796_s4 + $0x18] sm:$0xff]  ;;  %v41_v25 = vld [vmem:[%s797_s5 + $0x8] sm:$0xff] }
  0x11   :  { %291 = vperm.xlu0 %574, %v36_v19   ;;  %v40_v24 = vld [vmem:[%s797_s5] sm:$0xff]  ;;  %v42_v26 = vld [vmem:[%s797_s5 + $0x10] sm:$0xff]  ;;  %v43_v27 = vld [vmem:[%s797_s5 + $0x18] sm:$0xff] }
  0x12   :  { %530 = vmatmul.mubr.msk.f32.gmra.mxu0 %vm67_vm1, %v52_v9  ;;  %v44_v28 = vld [vmem:[#allocation2] sm:$0x1] }
  0x13   :  { %532 = vmatprep.mubr.msk.f32.mxu0 %vm67_vm1, %v53_v10  ;;  %v747_v29 = vld [vmem:[%s794_s2] ss:$0 sm:$0xff] }
  0x14   :  { %306 = vperm.xlu1 %575, %v39_v23  }
  0x15   :  { %296 = vperm.xlu0 %574, %v37_v22  }
  0x16   :  { %533 = vmatmul.mubr.msk.f32.gmra.mxu0 %vm67_vm1, %v54_v11 }
  0x17   :  { %535 = vmatprep.mubr.msk.f32.mxu0 %vm67_vm1, %v55_v12 }
  0x18   :  { %410 = vperm.xlu1 %575, %v41_v25  }
  0x19   :  { %405 = vperm.xlu0 %574, %v40_v24  }
  0x1a   :  { %536 = vmatmul.mubr.msk.f32.gmra.mxu0 %vm67_vm1, %v56_v13 }
  0x1b   :  { %538 = vmatprep.mubr.msk.f32.mxu0 %vm67_vm1, %v57_v14 }
  0x1c   :  { %420 = vperm.xlu1 %575, %v43_v27  }
  0x1d   :  { %415 = vperm.xlu0 %574, %v42_v26  }
  0x1e   :  { %539 = vmatmul.mubr.msk.f32.gmra.mxu0 %vm67_vm1, %v58_v15 }
  0x1f   :  { %541 = vmatprep.mubr.msk.f32.mxu0 %vm67_vm1, %v59_v16 }
  0x21   :  { %438 = vperm.xlu0 %574, %v44_v28  }
  0x22   :  { %542 = vmatmul.mubr.msk.f32.gmra.mxu0 %vm67_vm1, %v60_v17 }
  0xc6   :  { %v522_v30 = vpop.f32.mrf.mxu0 }
  0xc7   :  { %v192_v31 = vadd.f32 %v522_v30, %v747_v29  ;;  %v577_v30 = vld [vmem:[%s795_s3 + $0x8] sm:$0xff]   ;;  %s605_s3 = smov [#allocation3]  }
  0xc8   :  { %v186_v32 = vpop.f32.mrf.mxu0  ;;  %s460_s28 = sshll.u32 %s605_s3, 4  ;;  %s461_s28 = int_to_ptr.vmem [resolvable:$true] %s460_s28 }
  0xc9   :  { %v187_v33 = vadd.f32 %v747_v29, %v186_v32  ;;  %v266_v35 = vmax.f32 %v192_v31, 0.0  ;;  %v292_v31 = vpop.permute.xlu0 %291  ;;  %v302_v32 = vpop.permute.xlu1 %301  ;;  %s582_s29 = scalar_lea.vmem %s461_s28, 16  ;;  %s586_s30 = scalar_lea.vmem %s461_s28, 32 }
  0xca   :  { %v525_v34 = vpop.f32.mrf.mxu0  ;;  %p583_p0 = scmp.ne.s32.totalorder %s461_s28, %s582_s29  ;;  %p587_p1 = scmp.lt.s32.totalorder %s461_s28, %s461_s28 }
  0xcb   :  { %v265_v36 = vmax.f32 %v187_v33, 0.0  ;;  %v202_v37 = vadd.f32 %v525_v34, %v747_v29  ;;  %p588_p2 = scmp.lt.s32.totalorder %s586_s30, %s582_s29 }
  0xcc   :  { %v196_v38 = vpop.f32.mrf.mxu0 }
  0xcd   :  { %v752_v39 = vpack.c.bf16 %v266_v35, %v265_v36  ;;  %v197_v40 = vadd.f32 %v747_v29, %v196_v38  ;;  %v268_v42 = vmax.f32 %v202_v37, 0.0  ;;  %v297_v33 = vpop.permute.xlu0 %296  ;;  %v307_v35 = vpop.permute.xlu1 %306  ;;  %p589_p3 = por %p588_p2, %p587_p1 }
  0xce   :  { %v528_v41 = vpop.f32.mrf.mxu0 }
  0xcf   :  { %v267_v43 = vmax.f32 %v197_v40, 0.0  ;;  %v212_v22 = vadd.f32 %v528_v41, %v747_v29  ;;  %p590_p4 = pnand %p589_p3, %p583_p0 }
  0xd0   :  { %v206_v44 = vpop.f32.mrf.mxu0 }
  0xd1   :  { %v282_v45 = vpack.c.bf16 %v268_v42, %v267_v43  ;;  %v207_v19 = vadd.f32 %v747_v29, %v206_v44  ;;  %v270_v24 = vmax.f32 %v212_v22, 0.0  ;;  %v406_v41 = vpop.permute.xlu0 %405 }
  0xd2   :  { %v531_v46 = vpop.f32.mrf.mxu0 }
  0xd3   :  { %v222_v16 = vadd.f32 %v531_v46, %v747_v29  ;;  %v269_v23 = vmax.f32 %v207_v19, 0.0  ;;  %v330_v28 = vsel %vm319_vm2, %v282_v45, 0 }
  0xd4   :  { %v216_v47 = vpop.f32.mrf.mxu0 }
  0xd5   :  { %v217_v13 = vadd.f32 %v747_v29, %v216_v47  ;;  %v272_v18 = vmax.f32 %v222_v16, 0.0  ;;  %v283_v25 = vpack.c.bf16 %v270_v24, %v269_v23 }
  0xd6   :  { %v534_v48 = vpop.f32.mrf.mxu0 }
  0xd7   :  { %v232_v10 = vadd.f32 %v534_v48, %v747_v29  ;;  %v271_v17 = vmax.f32 %v217_v13, 0.0  ;;  %v333_v27 = vsel %vm319_vm2, %v283_v25, 0 }
  0xd8   :  { %v226_v49 = vpop.f32.mrf.mxu0 }
  0xd9   :  { %v227_v7 = vadd.f32 %v747_v29, %v226_v49  ;;  %v274_v12 = vmax.f32 %v232_v10, 0.0  ;;  %v284_v20 = vpack.c.bf16 %v272_v18, %v271_v17 }
  0xda   :  { %v537_v50 = vpop.f32.mrf.mxu0 }
  0xdb   :  { %v242_v4 = vadd.f32 %v537_v50, %v747_v29  ;;  %v273_v11 = vmax.f32 %v227_v7, 0.0  ;;  %v336_v26 = vsel %vm319_vm2, %v284_v20, 0 }
  0xdc   :  { %v236_v51 = vpop.f32.mrf.mxu0 }
  0xdd   :  { %v237_v1 = vadd.f32 %v747_v29, %v236_v51  ;;  %v276_v6 = vmax.f32 %v242_v4, 0.0  ;;  %v285_v14 = vpack.c.bf16 %v274_v12, %v273_v11  ;;  %v416_v51 = vpop.permute.xlu0 %415 }
  0xde   :  { %v540_v52 = vpop.f32.mrf.mxu0 }
  0xdf   :  { %v252_v58 = vadd.f32 %v540_v52, %v747_v29  ;;  %v275_v5 = vmax.f32 %v237_v1, 0.0  ;;  %v339_v21 = vsel %vm319_vm2, %v285_v14, 0 }
  0xe0   :  { %v246_v53 = vpop.f32.mrf.mxu0 }
  0xe1   :  { %v247_v55 = vadd.f32 %v747_v29, %v246_v53  ;;  %v278_v63 = vmax.f32 %v252_v58, 0.0  ;;  %v286_v8 = vpack.c.bf16 %v276_v6, %v275_v5  ;;  %v439_v1 = vpop.permute.xlu0 %438 }
  0xe2   :  { %v543_v54 = vpop.f32.mrf.mxu0 }
  0xe3   :  { %v262_v56 = vadd.f32 %v543_v54, %v747_v29  ;;  %v277_v60 = vmax.f32 %v247_v55, 0.0  ;;  %v342_v15 = vsel %vm319_vm2, %v286_v8, 0 }
  0xe4   :  { %v256_v57 = vpop.f32.mrf.mxu0 }
  0xe5   :  { %v257_v59 = vadd.f32 %v747_v29, %v256_v57  ;;  %v280_v61 = vmax.f32 %v262_v56, 0.0  ;;  %v287_v2 = vpack.c.bf16 %v278_v63, %v277_v60  ;;  %v327_v29 = vsel %vm319_vm2, %v752_v39, 0 }
  0xe6   :  { %v441_v57 = vlaneseq }
  0xe7   :  { %v279_v62 = vmax.f32 %v257_v59, 0.0  ;;  %v345_v9 = vsel %vm319_vm2, %v287_v2, 0 }
  0xe8   :  { %v442_v60 = vshrl.u32 %v441_v57, 7 }
  0xe9   :  { %v288_v0 = vpack.c.bf16 %v280_v61, %v279_v62 }
  0xea   :  { %v443_v63 = vsub.s32 0, %v442_v60 }
  0xeb   :  { %564 = vmatprep.subr.msk.bf16.mxu1 %vm319_vm2, %v288_v0  ;;  %v348_v3 = vsel %vm319_vm2, %v288_v0, 0 }
  0xec   :  { %545 = vmatpush3.bf16.xpose.msra.mxu1 %v348_v3  ;;  %v444_v3 = vrot.slane %v439_v1, %v443_v63 }
  0xed   :  { %565 = vmatprep.subr.msk.bf16.mxu1 %vm319_vm2, %v287_v2 }
  0xf4   :  { %547 = vmatpush3.bf16.xpose.msra.mxu1 %v345_v9 }
  0xf5   :  { %566 = vmatprep.subr.msk.bf16.mxu1 %vm319_vm2, %v286_v8 }
  0xfc   :  { %549 = vmatpush3.bf16.xpose.msra.mxu1 %v342_v15 }
  0xfd   :  { %567 = vmatprep.subr.msk.bf16.mxu1 %vm319_vm2, %v285_v14 }
 0x104   :  { %551 = vmatpush3.bf16.xpose.msra.mxu1 %v339_v21 }
 0x105   :  { %568 = vmatprep.subr.msk.bf16.mxu1 %vm319_vm2, %v284_v20 }
 0x10c   :  { %553 = vmatpush3.bf16.xpose.msra.mxu1 %v336_v26 }
 0x10d   :  { %569 = vmatprep.subr.msk.bf16.mxu1 %vm319_vm2, %v283_v25 }
 0x114   :  { %555 = vmatpush3.bf16.xpose.msra.mxu1 %v333_v27 }
 0x115   :  { %570 = vmatprep.subr.msk.bf16.mxu1 %vm319_vm2, %v282_v45  ;;  %v411_v45 = vpop.permute.xlu1 %410 }
 0x119   :  { %v421_v54 = vpop.permute.xlu1 %420 }
 0x11c   :  { %557 = vmatpush3.bf16.xpose.msra.mxu1 %v330_v28 }
 0x11d   :  { %571 = vmatprep.subr.msk.bf16.mxu1 %vm319_vm2, %v752_v39 }
 0x124   :  { %559 = vmatpush3.bf16.xpose.msra.mxu1 %v327_v29 }
 0x12b   :  { %561 = vmatmul.mubr.msk.bf16.vlgmr.msra.gmra.mxu1 %vm319_vm2, %v577_v30 }
 0x1eb   :  { %v562_v34 = vpop.f32.mrf.mxu1 }
 0x1ec   :  { %v393_v40 = vadd.f32 %v562_v34, %v302_v32 }
 0x1ed   :  { %v384_v36 = vpop.f32.mrf.mxu1 }
 0x1ee   :  { %v385_v37 = vadd.f32 %v384_v36, %v292_v31  ;;  %v401_v46 = vmax.f32 %v393_v40, 0.0 }
 0x1ef   :  { %v563_v38 = vpop.f32.mrf.mxu1 }
 0x1f0   :  { %v399_v43 = vmax.f32 %v385_v37, 0.0  ;;  %v396_v39 = vadd.f32 %v563_v38, %v307_v35  ;;  %v425_v52 = vmul.f32 %v416_v51, %v401_v46 }
 0x1f1   :  { %v387_v42 = vpop.f32.mrf.mxu1 }
 0x1f2   :  { %v388_v44 = vadd.f32 %v387_v42, %v297_v33  ;;  %v423_v48 = vmul.f32 %v406_v41, %v399_v43  ;;  %v402_v49 = vmax.f32 %v396_v39, 0.0 }
 0x1f4   :  { %v400_v47 = vmax.f32 %v388_v44, 0.0  ;;  %v426_v55 = vmul.f32 %v421_v54, %v402_v49 }
 0x1f6   :  { %v424_v50 = vmul.f32 %v411_v45, %v400_v47 }
 0x1f8   :  { %v427_v53 = vadd.f32 %v424_v50, %v423_v48 }
 0x1fa   :  { %v428_v56 = vadd.f32 %v427_v53, %v425_v52 }
 0x1fc   :  { %v429_v58 = vadd.f32 %v428_v56, %v426_v55 }
 0x1fe   :  { %v430_v59 = vrot.slane %v429_v58, 4 }
 0x200   :  { %v431_v61 = vadd.f32 %v430_v59, %v429_v58 }
 0x202   :  { %v432_v62 = vrot.slane %v431_v61, 2 }
 0x204   :  { %v433_v0 = vadd.f32 %v432_v62, %v431_v61 }
 0x206   :  { %v434_v2 = vrot.slane %v433_v0, 1 }
 0x208   :  { %v435_v4 = vadd.f32 %v434_v2, %v433_v0 }
 0x20a   :  { %v445_v5 = vadd.f32 %v444_v3, %v435_v4 }
 0x20c   :  { %v490_v6 = vclamps-f32 %v445_v5, 30.0 }
 0x20e   :  { %v448_v7 = vsub.f32 0.0, %v490_v6 }
 0x210   :  { %v449_v8 = vmul.f32 1.442695, %v448_v7 }
 0x212   :  { %578 = vpow2.f32 %v449_v8 }
 0x21f   :  { %v579_v9 = vpop.eup %578 }
 0x220   :  { %v451_v10 = vadd.f32 1.0, %v579_v9 }
 0x222   :  { %580 = vrcp.f32 %v451_v10 }
 0x22f   :  { %v581_v11 = vpop.eup %580 }
 0x230   :  { %453 = vst [vmem:[#allocation3] sm:$0x1] %v581_v11 }
 0x231   :  { %593 = shalt.err (!%p590_p4)
}
 0x232   :  { %463 = dma.vmem_to_hbm [thread:$0]  %s461_s28, 16, %s799_s7, [#allocation4]  }
 0x233   :  { %602 = dma.done.wait [#allocation4], 16  }
 0x234   :  { %603 = vsyncadd [#allocation4], 4294967280 }
 0x235   :  { %467 = vsyncpa [#allocation4], 1 }

</bundles_post_ra>
